<compile_context>
chip_gen: v5e
topology: v5e:2x2
jax: 0.10.0
libtpu: 0.0.40
codegen_flags: <defaults>
</compile_context>

<pallas_src>
import jax
import jax.numpy as jnp
from jax.experimental import pallas as pl
from jax.experimental.pallas import tpu as pltpu

EPS = 1e-5
OUT_PAD = 8  # padded width of the final (width-1) output layer (full-dim last axis)


# ---------------------------------------------------------------------------
# Kernel: fused 5-layer MLP (BN pre-folded, dropout = identity)
# ---------------------------------------------------------------------------
def mlp_kernel(x_ref, w1_ref, w2_ref, w3_ref, w4_ref, w5_ref, b_ref, out_ref):
    cdt = w1_ref.dtype  # compute dtype of the MXU operands (bf16 or f32)

    def layer(h, w_ref, b_row, width, relu=True):
        z = jnp.dot(h.astype(cdt), w_ref[...], preferred_element_type=jnp.float32)
        z = z + b_ref[b_row:b_row + 1, 0:width]          # (1, width) f32 broadcast
        return jnp.maximum(z, 0.0) if relu else z

    h = layer(x_ref[...], w1_ref, 0, 256)                # layer1 + bn1 + relu
    h = layer(h, w2_ref, 1, 128)                         # layer2 + bn2 + relu
    h = layer(h, w3_ref, 2, 64)                          # layer3 + bn3 + relu
    h = layer(h, w4_ref, 3, 32)                          # layer4 + relu
    out_ref[...] = layer(h, w5_ref, 4, OUT_PAD, relu=False).astype(out_ref.dtype)


# ---------------------------------------------------------------------------
# Parameter prep: BN folding, output padding, bias packing, dtype cast.
# Call ONCE and reuse the folded tuple for every inference call.
# ---------------------------------------------------------------------------
def fold_params(params, compute_dtype=jnp.bfloat16):
    folded = {}
    for li in (1, 2, 3):
        s = params[f"g{li}"] * jax.lax.rsqrt(params[f"v{li}"] + EPS)   # (1, H)
        folded[f"w{li}"] = params[f"w{li}"] * s
        folded[f"b{li}"] = (params[f"b{li}"] - params[f"m{li}"]) * s + params[f"be{li}"]
    folded["w4"], folded["b4"] = params["w4"], params["b4"]
    # zero-pad the (32, 1) output layer to (32, OUT_PAD)
    folded["w5"] = jnp.zeros((params["w5"].shape[0], OUT_PAD), jnp.float32) \
        .at[:, :1].set(params["w5"])
    folded["b5"] = jnp.zeros((1, OUT_PAD), jnp.float32).at[:, :1].set(params["b5"])
    # pack the five biases into one (8, 256) f32 slab: row i-1 = bias of layer i
    bpack = jnp.zeros((8, 256), jnp.float32)
    for row, li in enumerate((1, 2, 3, 4, 5)):
        b = folded[f"b{li}"]
        bpack = bpack.at[row, :b.shape[1]].set(b[0])
    ws = tuple(folded[f"w{li}"].astype(compute_dtype) for li in (1, 2, 3, 4, 5))
    return ws + (bpack,)


# ---------------------------------------------------------------------------
# Wrapper
# ---------------------------------------------------------------------------
def cnn_execution_predictor(x, folded, *, block_b=1024):
    w1, w2, w3, w4, w5, bpack = folded
    B, F = x.shape
    x = x.astype(w1.dtype)

    # Batch tile: multiple of 8 sublanes, capped at block_b (VMEM is not the
    # constraint; per-grid-step overhead is).  Aim for >= 2 grid steps for
    # moderate/large B so v7x megacore can shard the "parallel" batch axis.
    half = -(-B // 2)                                   # cdiv(B, 2)
    tb = min(block_b, max(8, ((half + 7) // 8) * 8))
    grid = (pl.cdiv(B, tb),)                            # ragged tail: Pallas masks OOB

    const = lambda i: (0, 0)  # weights resident in VMEM across the batch grid
    out = pl.pallas_call(
        mlp_kernel,
        out_shape=jax.ShapeDtypeStruct((B, OUT_PAD), jnp.float32),
        grid=grid,
        in_specs=[
            pl.BlockSpec((tb, F), lambda i: (i, 0)),
            pl.BlockSpec(w1.shape, const),
            pl.BlockSpec(w2.shape, const),
            pl.BlockSpec(w3.shape, const),
            pl.BlockSpec(w4.shape, const),
            pl.BlockSpec(w5.shape, const),
            pl.BlockSpec(bpack.shape, const),
        ],
        out_specs=pl.BlockSpec((tb, OUT_PAD), lambda i: (i, 0)),
        compiler_params=pltpu.CompilerParams(dimension_semantics=("parallel",)),
    )(x, w1, w2, w3, w4, w5, bpack)
    return out[:, :1]


# ---------------------------------------------------------------------------
# Synthetic parameters + pure-JAX reference (inference-mode PyTorch semantics)
# ---------------------------------------------------------------------------
def init_params(key, input_size):
    dims = [(input_size, 256), (256, 128), (128, 64), (64, 32), (32, 1)]
    keys = jax.random.split(key, 32)
    ki = iter(range(32))
    params = {}
    for li, (fan_in, fan_out) in enumerate(dims, start=1):
        bound = 1.0 / jnp.sqrt(fan_in)
        # stored as (in, out): transpose of torch's (out, in) Linear weight
        params[f"w{li}"] = jax.random.uniform(
            keys[next(ki)], (fan_in, fan_out), jnp.float32, -bound, bound)
        params[f"b{li}"] = jax.random.uniform(
            keys[next(ki)], (1, fan_out), jnp.float32, -bound, bound)
    for li, h in zip((1, 2, 3), (256, 128, 64)):
        params[f"g{li}"] = 1.0 + 0.1 * jax.random.normal(keys[next(ki)], (1, h), jnp.float32)
        params[f"be{li}"] = 0.1 * jax.random.normal(keys[next(ki)], (1, h), jnp.float32)
        params[f"m{li}"] = 0.1 * jax.random.normal(keys[next(ki)], (1, h), jnp.float32)
        params[f"v{li}"] = jax.random.uniform(keys[next(ki)], (1, h), jnp.float32, 0.5, 1.5)
    return params


def reference_forward(x, params):
    def lin(h, w, b):
        return h @ w + b

    def bn(h, g, be, m, v):
        return (h - m) / jnp.sqrt(v + EPS) * g + be

    h = jax.nn.relu(bn(lin(x, params["w1"], params["b1"]),
                       params["g1"], params["be1"], params["m1"], params["v1"]))
    h = jax.nn.relu(bn(lin(h, params["w2"], params["b2"]),
                       params["g2"], params["be2"], params["m2"], params["v2"]))
    h = jax.nn.relu(bn(lin(h, params["w3"], params["b3"]),
                       params["g3"], params["be3"], params["m3"], params["v3"]))
    h = jax.nn.relu(lin(h, params["w4"], params["b4"]))
    return lin(h, params["w5"], params["b5"])


if __name__ == "__main__":
    key = jax.random.PRNGKey(0)
    k_x, k_p = jax.random.split(key)

    batch = 8
    input_size = 16  # numeric features + one-hot 'Algorithm' columns

    x = jax.random.normal(k_x, (batch, input_size), dtype=jnp.float32)
    params = init_params(k_p, input_size)
    ref = reference_forward(x, params)

    # f32 compute path: tight correctness check against the pure-JAX reference.
    folded_f32 = fold_params(params, compute_dtype=jnp.float32)
    out_f32 = jax.block_until_ready(cnn_execution_predictor(x, folded_f32))
    assert out_f32.shape == (batch, 1)
    assert jnp.allclose(out_f32, ref, atol=1e-4, rtol=1e-4), \
        float(jnp.max(jnp.abs(out_f32 - ref)))

    # bf16 compute path (default/fast MXU path): looser tolerance.
    folded_bf16 = fold_params(params, compute_dtype=jnp.bfloat16)
    out_bf16 = jax.block_until_ready(cnn_execution_predictor(x, folded_bf16))
    assert out_bf16.shape == (batch, 1)
    assert jnp.allclose(out_bf16, ref, atol=5e-2, rtol=5e-2), \
        float(jnp.max(jnp.abs(out_bf16 - ref)))

    print("KERNEL_OK")
</pallas_src>

<mosaic_0001>
module attributes {stable_mosaic.version = 11 : i64} {
  func.func @mlp_kernel(%arg0: i32, %arg1: memref<8x16xf32, #tpu.memory_space<vmem>>, %arg2: memref<16x256xf32, #tpu.memory_space<vmem>>, %arg3: memref<256x128xf32, #tpu.memory_space<vmem>>, %arg4: memref<128x64xf32, #tpu.memory_space<vmem>>, %arg5: memref<64x32xf32, #tpu.memory_space<vmem>>, %arg6: memref<32x8xf32, #tpu.memory_space<vmem>>, %arg7: memref<8x256xf32, #tpu.memory_space<vmem>>, %arg8: memref<8x8xf32, #tpu.memory_space<vmem>>) attributes {dimension_semantics = [#tpu.dimension_semantics<parallel>], iteration_bounds = array<i64: 1>, scalar_prefetch = 0 : i64, scratch_operands = 0 : i64, tpu.core_type = #tpu.core_type<tc>, window_params = [{transform_indices = @transform_0, window_bounds = array<i64: 8, 16>}, {pipeline_mode = #tpu.pipeline_mode<synchronous>, transform_indices = @transform_1, window_bounds = array<i64: 16, 256>}, {pipeline_mode = #tpu.pipeline_mode<synchronous>, transform_indices = @transform_2, window_bounds = array<i64: 256, 128>}, {pipeline_mode = #tpu.pipeline_mode<synchronous>, transform_indices = @transform_3, window_bounds = array<i64: 128, 64>}, {pipeline_mode = #tpu.pipeline_mode<synchronous>, transform_indices = @transform_4, window_bounds = array<i64: 64, 32>}, {pipeline_mode = #tpu.pipeline_mode<synchronous>, transform_indices = @transform_5, window_bounds = array<i64: 32, 8>}, {pipeline_mode = #tpu.pipeline_mode<synchronous>, transform_indices = @transform_6, window_bounds = array<i64: 8, 256>}, {transform_indices = @transform_7, window_bounds = array<i64: 8, 8>}]} {
    %c0 = arith.constant 0 : index
    %c0_0 = arith.constant 0 : index
    %0 = vector.load %arg1[%c0, %c0_0] : memref<8x16xf32, #tpu.memory_space<vmem>>, vector<8x16xf32>
    %c0_1 = arith.constant 0 : index
    %c0_2 = arith.constant 0 : index
    %1 = vector.load %arg2[%c0_1, %c0_2] : memref<16x256xf32, #tpu.memory_space<vmem>>, vector<16x256xf32>
    %cst = arith.constant dense<0.000000e+00> : vector<8x256xf32>
    %2 = tpu.matmul %0, %1, %cst {dimension_numbers = #tpu.dot_dimension_numbers<[1], [0], [0], [1], [0, 0, 1, 1], [], []>} : vector<8x16xf32>, vector<16x256xf32>, vector<8x256xf32> -> vector<8x256xf32>
    %c0_3 = arith.constant 0 : index
    %c0_4 = arith.constant 0 : index
    %3 = vector.load %arg7[%c0_3, %c0_4] : memref<8x256xf32, #tpu.memory_space<vmem>>, vector<1x256xf32>
    %4 = vector.broadcast %3 : vector<1x256xf32> to vector<8x256xf32>
    %5 = arith.addf %2, %4 : vector<8x256xf32>
    %cst_5 = arith.constant 0.000000e+00 : f32
    %6 = vector.broadcast %cst_5 : f32 to vector<8x256xf32>
    %7 = arith.maximumf %5, %6 : vector<8x256xf32>
    %c0_6 = arith.constant 0 : index
    %c0_7 = arith.constant 0 : index
    %8 = vector.load %arg3[%c0_6, %c0_7] : memref<256x128xf32, #tpu.memory_space<vmem>>, vector<256x128xf32>
    %cst_8 = arith.constant dense<0.000000e+00> : vector<8x128xf32>
    %9 = tpu.matmul %7, %8, %cst_8 {dimension_numbers = #tpu.dot_dimension_numbers<[1], [0], [0], [1], [0, 0, 1, 1], [], []>} : vector<8x256xf32>, vector<256x128xf32>, vector<8x128xf32> -> vector<8x128xf32>
    %c1 = arith.constant 1 : index
    %c0_9 = arith.constant 0 : index
    %10 = vector.load %arg7[%c1, %c0_9] : memref<8x256xf32, #tpu.memory_space<vmem>>, vector<1x128xf32>
    %11 = vector.broadcast %10 : vector<1x128xf32> to vector<8x128xf32>
    %12 = arith.addf %9, %11 : vector<8x128xf32>
    %cst_10 = arith.constant 0.000000e+00 : f32
    %13 = vector.broadcast %cst_10 : f32 to vector<8x128xf32>
    %14 = arith.maximumf %12, %13 : vector<8x128xf32>
    %c0_11 = arith.constant 0 : index
    %c0_12 = arith.constant 0 : index
    %15 = vector.load %arg4[%c0_11, %c0_12] : memref<128x64xf32, #tpu.memory_space<vmem>>, vector<128x64xf32>
    %cst_13 = arith.constant dense<0.000000e+00> : vector<8x64xf32>
    %16 = tpu.matmul %14, %15, %cst_13 {dimension_numbers = #tpu.dot_dimension_numbers<[1], [0], [0], [1], [0, 0, 1, 1], [], []>} : vector<8x128xf32>, vector<128x64xf32>, vector<8x64xf32> -> vector<8x64xf32>
    %c2 = arith.constant 2 : index
    %c0_14 = arith.constant 0 : index
    %17 = vector.load %arg7[%c2, %c0_14] : memref<8x256xf32, #tpu.memory_space<vmem>>, vector<1x64xf32>
    %18 = vector.broadcast %17 : vector<1x64xf32> to vector<8x64xf32>
    %19 = arith.addf %16, %18 : vector<8x64xf32>
    %cst_15 = arith.constant 0.000000e+00 : f32
    %20 = vector.broadcast %cst_15 : f32 to vector<8x64xf32>
    %21 = arith.maximumf %19, %20 : vector<8x64xf32>
    %c0_16 = arith.constant 0 : index
    %c0_17 = arith.constant 0 : index
    %22 = vector.load %arg5[%c0_16, %c0_17] : memref<64x32xf32, #tpu.memory_space<vmem>>, vector<64x32xf32>
    %cst_18 = arith.constant dense<0.000000e+00> : vector<8x32xf32>
    %23 = tpu.matmul %21, %22, %cst_18 {dimension_numbers = #tpu.dot_dimension_numbers<[1], [0], [0], [1], [0, 0, 1, 1], [], []>} : vector<8x64xf32>, vector<64x32xf32>, vector<8x32xf32> -> vector<8x32xf32>
    %c3 = arith.constant 3 : index
    %c0_19 = arith.constant 0 : index
    %24 = vector.load %arg7[%c3, %c0_19] : memref<8x256xf32, #tpu.memory_space<vmem>>, vector<1x32xf32>
    %25 = vector.broadcast %24 : vector<1x32xf32> to vector<8x32xf32>
    %26 = arith.addf %23, %25 : vector<8x32xf32>
    %cst_20 = arith.constant 0.000000e+00 : f32
    %27 = vector.broadcast %cst_20 : f32 to vector<8x32xf32>
    %28 = arith.maximumf %26, %27 : vector<8x32xf32>
    %c0_21 = arith.constant 0 : index
    %c0_22 = arith.constant 0 : index
    %29 = vector.load %arg6[%c0_21, %c0_22] : memref<32x8xf32, #tpu.memory_space<vmem>>, vector<32x8xf32>
    %cst_23 = arith.constant dense<0.000000e+00> : vector<8x8xf32>
    %30 = tpu.matmul %28, %29, %cst_23 {dimension_numbers = #tpu.dot_dimension_numbers<[1], [0], [0], [1], [0, 0, 1, 1], [], []>} : vector<8x32xf32>, vector<32x8xf32>, vector<8x8xf32> -> vector<8x8xf32>
    %c4 = arith.constant 4 : index
    %c0_24 = arith.constant 0 : index
    %31 = vector.load %arg7[%c4, %c0_24] : memref<8x256xf32, #tpu.memory_space<vmem>>, vector<1x8xf32>
    %32 = vector.broadcast %31 : vector<1x8xf32> to vector<8x8xf32>
    %33 = arith.addf %30, %32 : vector<8x8xf32>
    %c0_25 = arith.constant 0 : index
    %c0_26 = arith.constant 0 : index
    %34 = vector.load %arg8[%c0_25, %c0_26] : memref<8x8xf32, #tpu.memory_space<vmem>>, vector<8x8xf32>
    tpu.vector_store %arg8[%c0_25, %c0_26], %33 {strides = array<i32>} : memref<8x8xf32, #tpu.memory_space<vmem>>, vector<8x8xf32>,
    return
  }
  func.func @transform_0(%arg0: i32) -> (i32, i32) {
    %c0_i32 = arith.constant 0 : i32
    %c0_i32_0 = arith.constant 0 : i32
    return %arg0, %c0_i32 : i32, i32
  }
  func.func @transform_1(%arg0: i32) -> (i32, i32) {
    %c0_i32 = arith.constant 0 : i32
    %c0_i32_0 = arith.constant 0 : i32
    %c0_i32_1 = arith.constant 0 : i32
    return %c0_i32, %c0_i32_0 : i32, i32
  }
  func.func @transform_2(%arg0: i32) -> (i32, i32) {
    %c0_i32 = arith.constant 0 : i32
    %c0_i32_0 = arith.constant 0 : i32
    %c0_i32_1 = arith.constant 0 : i32
    return %c0_i32, %c0_i32_0 : i32, i32
  }
  func.func @transform_3(%arg0: i32) -> (i32, i32) {
    %c0_i32 = arith.constant 0 : i32
    %c0_i32_0 = arith.constant 0 : i32
    %c0_i32_1 = arith.constant 0 : i32
    return %c0_i32, %c0_i32_0 : i32, i32
  }
  func.func @transform_4(%arg0: i32) -> (i32, i32) {
    %c0_i32 = arith.constant 0 : i32
    %c0_i32_0 = arith.constant 0 : i32
    %c0_i32_1 = arith.constant 0 : i32
    return %c0_i32, %c0_i32_0 : i32, i32
  }
  func.func @transform_5(%arg0: i32) -> (i32, i32) {
    %c0_i32 = arith.constant 0 : i32
    %c0_i32_0 = arith.constant 0 : i32
    %c0_i32_1 = arith.constant 0 : i32
    return %c0_i32, %c0_i32_0 : i32, i32
  }
  func.func @transform_6(%arg0: i32) -> (i32, i32) {
    %c0_i32 = arith.constant 0 : i32
    %c0_i32_0 = arith.constant 0 : i32
    %c0_i32_1 = arith.constant 0 : i32
    return %c0_i32, %c0_i32_0 : i32, i32
  }
  func.func @transform_7(%arg0: i32) -> (i32, i32) {
    %c0_i32 = arith.constant 0 : i32
    %c0_i32_0 = arith.constant 0 : i32
    return %arg0, %c0_i32 : i32, i32
  }
}

</mosaic_0001>

<bundles_post_ra>
// kernel: tpu_custom_call.1
= control target key start
LH: loop header
LB: loop body
LE: loop exit
PB: predicated region body
PF: predicated region fallthrough
CT: control target
= control target key end

     0   :  { %12 = vsyncpa [#allocation3], 0  ;;  %s518_s0 = inlined_call_operand.vmem [shape: f32[8,16], index: 0, kind: input, shape index: {}]   ;;  %s519_s1 = inlined_call_operand.vmem [shape: f32[16,256], index: 1, kind: input, shape index: {}]   ;;  %s520_s2 = inlined_call_operand.hbm [shape: f32[256,128], index: 2, kind: input, shape index: {}]   ;;  %s521_s3 = inlined_call_operand.vmem [shape: f32[128,64], index: 3, kind: input, shape index: {}]   ;;  %s522_s4 = inlined_call_operand.vmem [shape: f32[64,32], index: 4, kind: input, shape index: {}]   ;;  %s523_s5 = inlined_call_operand.vmem [shape: f32[32,8], index: 5, kind: input, shape index: {}]   ;;  %s524_s6 = inlined_call_operand.vmem [shape: f32[8,256], index: 6, kind: input, shape index: {}]   ;;  %s525_s7 = inlined_call_operand.hbm [shape: f32[8,8], index: 7, kind: output, shape index: {}]  }
   0x1   :  { %13 = vsyncpa [#allocation4], 0  ;;  %s22_s26 = sshll.u32 %s520_s2, 4  ;;  %s354_s27 = smov [#allocation2]   ;;  %s23_s26 = int_to_ptr.hbm [resolvable:$true] %s22_s26 }
   0x2   :  { %s24_s28 = sshll.u32 %s354_s27, 4  ;;  %s355_s29 = smov 128   ;;  %s25_s28 = int_to_ptr.vmem [resolvable:$true] %s24_s28 }
   0x3   :  { %s356_s30 = smov 8  }
   0x4   :  { %30 = dma.hbm_to_vmem [thread:$0]  %s23_s26, 4096, %s25_s28, [#allocation3], %s355_s29, %s355_s29, %s356_s30  }
   0x5   :  { %350 = dma.done.wait [#allocation3], 4096  }
   0x6   :  { %351 = vsyncadd [#allocation3], 4294963200  ;;  %v46_v0 = vld [vmem:[%s519_s1 + $0x10] sm:$0xff]  ;;  %v44_v1 = vld [vmem:[%s519_s1] sm:$0xff]  ;;  %vm54_vm0 = vcmask 130048   ;;  %vm221_vm1 = vcmask 523264  }
   0x7   :  { %v47_v2 = vld [vmem:[%s519_s1 + $0x18] sm:$0xff]  ;;  %72 = vmatpush.msra.mxu0 %v46_v0  ;;  %v43_v3 = vld [vmem:[%s518_s0] sm:$0xff]  ;;  %v45_v4 = vld [vmem:[%s519_s1 + $0x8] sm:$0xff]  ;;  %vm251_vm2 = vcmask 261120   ;;  %s357_s27 = smov [#allocation5]   ;;  %vm275_vm3 = vcmask 64512  }
   0x8   :  { %92 = vmatpush.msra.mxu1 %v47_v2  ;;  %v115_v5 = vld [vmem:[#allocation2 + $0x78] sm:$0xff]  ;;  %v114_v6 = vld [vmem:[#allocation2 + $0x70] sm:$0xff]  ;;  %v113_v8 = vld [vmem:[#allocation2 + $0x68] sm:$0xff]  ;;  %s282_s28 = sshll.u32 %s357_s27, 4  ;;  %s283_s28 = int_to_ptr.vmem [resolvable:$true] %s282_s28 }
   0x9   :  { %133 = vmatpush.msra.mxu2 %v115_v5  ;;  %v131_v7 = vld [vmem:[#allocation2 + $0xf8] sm:$0xff]  ;;  %73 = vmatpush.msra.mxu0 %v44_v1  ;;  %v130_v9 = vld [vmem:[#allocation2 + $0xf0] sm:$0xff]  ;;  %v112_v10 = vld [vmem:[#allocation2 + $0x60] sm:$0xff] }
   0xa   :  { %93 = vmatpush.msra.mxu1 %v45_v4  ;;  %294 = vmatmul.msk.f32.vlgmr.msra.gmra.mxu0 %vm54_vm0, %v43_v3  ;;  %v129_v11 = vld [vmem:[#allocation2 + $0xe8] sm:$0xff]  ;;  %v111_v12 = vld [vmem:[#allocation2 + $0x58] sm:$0xff]  ;;  %v128_v13 = vld [vmem:[#allocation2 + $0xe0] sm:$0xff] }
   0xb   :  { %295 = vmatmul.msk.f32.vlgmr.msra.gmra.mxu1 %vm54_vm0, %v43_v3  ;;  %134 = vmatpush.msra.mxu2 %v114_v6  ;;  %v110_v14 = vld [vmem:[#allocation2 + $0x50] sm:$0xff]  ;;  %v127_v15 = vld [vmem:[#allocation2 + $0xd8] sm:$0xff]  ;;  %v109_v16 = vld [vmem:[#allocation2 + $0x48] sm:$0xff] }
   0xc   :  { %153 = vmatpush.msra.mxu3 %v131_v7  ;;  %v126_v17 = vld [vmem:[#allocation2 + $0xd0] sm:$0xff]  ;;  %v108_v18 = vld [vmem:[#allocation2 + $0x40] sm:$0xff]  ;;  %v125_v19 = vld [vmem:[#allocation2 + $0xc8] sm:$0xff] }
   0xd   :  { %135 = vmatpush.msra.mxu2 %v113_v8  ;;  %v107_v20 = vld [vmem:[#allocation2 + $0x38] sm:$0xff]  ;;  %v124_v21 = vld [vmem:[#allocation2 + $0xc0] sm:$0xff]  ;;  %v106_v22 = vld [vmem:[#allocation2 + $0x30] sm:$0xff] }
   0xe   :  { %154 = vmatpush.msra.mxu3 %v130_v9  ;;  %v123_v23 = vld [vmem:[#allocation2 + $0xb8] sm:$0xff]  ;;  %v105_v24 = vld [vmem:[#allocation2 + $0x28] sm:$0xff]  ;;  %v122_v25 = vld [vmem:[#allocation2 + $0xb0] sm:$0xff] }
   0xf   :  { %136 = vmatpush.msra.mxu2 %v112_v10  ;;  %v104_v26 = vld [vmem:[#allocation2 + $0x20] sm:$0xff]  ;;  %v121_v27 = vld [vmem:[#allocation2 + $0xa8] sm:$0xff]  ;;  %v103_v28 = vld [vmem:[#allocation2 + $0x18] sm:$0xff] }
  0x10   :  { %155 = vmatpush.msra.mxu3 %v129_v11  ;;  %v120_v29 = vld [vmem:[#allocation2 + $0xa0] sm:$0xff]  ;;  %v102_v30 = vld [vmem:[#allocation2 + $0x10] sm:$0xff]  ;;  %v119_v31 = vld [vmem:[#allocation2 + $0x98] sm:$0xff] }
  0x11   :  { %137 = vmatpush.msra.mxu2 %v111_v12  ;;  %v101_v32 = vld [vmem:[#allocation2 + $0x8] sm:$0xff]  ;;  %v118_v33 = vld [vmem:[#allocation2 + $0x90] sm:$0xff]  ;;  %v100_v34 = vld [vmem:[#allocation2] sm:$0xff] }
  0x12   :  { %156 = vmatpush.msra.mxu3 %v128_v13  ;;  %v117_v35 = vld [vmem:[#allocation2 + $0x88] sm:$0xff]  ;;  %v116_v36 = vld [vmem:[#allocation2 + $0x80] sm:$0xff]  ;;  %v189_v37 = vld [vmem:[%s521_s3 + $0x78] sm:$0xff] }
  0x13   :  { %138 = vmatpush.msra.mxu2 %v110_v14  ;;  %v188_v38 = vld [vmem:[%s521_s3 + $0x70] sm:$0xff]  ;;  %191 = vmatpush.msrb.mxu0 %v189_v37  ;;  %v187_v39 = vld [vmem:[%s521_s3 + $0x68] sm:$0xff]  ;;  %v186_v40 = vld [vmem:[%s521_s3 + $0x60] sm:$0xff] }
  0x14   :  { %157 = vmatpush.msra.mxu3 %v127_v15  ;;  %v185_v41 = vld [vmem:[%s521_s3 + $0x58] sm:$0xff]  ;;  %v184_v42 = vld [vmem:[%s521_s3 + $0x50] sm:$0xff]  ;;  %v183_v43 = vld [vmem:[%s521_s3 + $0x48] sm:$0xff] }
  0x15   :  { %139 = vmatpush.msra.mxu2 %v109_v16  ;;  %192 = vmatpush.msrb.mxu0 %v188_v38  ;;  %v182_v44 = vld [vmem:[%s521_s3 + $0x40] sm:$0xff]  ;;  %v181_v45 = vld [vmem:[%s521_s3 + $0x38] sm:$0xff]  ;;  %v180_v46 = vld [vmem:[%s521_s3 + $0x30] sm:$0xff] }
  0x16   :  { %158 = vmatpush.msra.mxu3 %v126_v17  ;;  %v179_v47 = vld [vmem:[%s521_s3 + $0x28] sm:$0xff]  ;;  %v178_v48 = vld [vmem:[%s521_s3 + $0x20] sm:$0xff]  ;;  %v177_v58 = vld [vmem:[%s521_s3 + $0x18] sm:$0xff] }
  0x17   :  { %140 = vmatpush.msra.mxu2 %v108_v18  ;;  %193 = vmatpush.msrb.mxu0 %v187_v39  ;;  %v48_v49 = vld [vmem:[%s524_s6] ss:$8 sm:$0x3]  ;;  %v176_v59 = vld [vmem:[%s521_s3 + $0x10] sm:$0xff]  ;;  %v219_v62 = vld [vmem:[%s522_s4 + $0x38] sm:$0xff] }
  0x18   :  { %159 = vmatpush.msra.mxu3 %v125_v19  ;;  %v50_v50 = vperm.slane %v48_v49, 0  ;;  %v51_v51 = vperm.slane %v48_v49, 1  ;;  %v175_v60 = vld [vmem:[%s521_s3 + $0x8] sm:$0xff]  ;;  %v174_v61 = vld [vmem:[%s521_s3] sm:$0xff]  ;;  %v218_v63 = vld [vmem:[%s522_s4 + $0x30] sm:$0xff]  ;;  %233 = vmatpush.msrb.mxu1 %v219_v62 }
  0x19   :  { %141 = vmatpush.msra.mxu2 %v107_v20  ;;  %194 = vmatpush.msrb.mxu0 %v186_v40  ;;  %v217_v0 = vld [vmem:[%s522_s4 + $0x28] sm:$0xff]  ;;  %v216_v1 = vld [vmem:[%s522_s4 + $0x20] sm:$0xff]  ;;  %v215_v2 = vld [vmem:[%s522_s4 + $0x18] sm:$0xff] }
  0x1a   :  { %160 = vmatpush.msra.mxu3 %v124_v21  ;;  %234 = vmatpush.msrb.mxu1 %v218_v63  ;;  %v132_v3 = vld [vmem:[%s524_s6 + $0x1] ss:$0 sm:$0xff]  ;;  %v214_v9 = vld [vmem:[%s522_s4 + $0x10] sm:$0xff]  ;;  %v213_v10 = vld [vmem:[%s522_s4 + $0x8] sm:$0xff] }
  0x1b   :  { %142 = vmatpush.msra.mxu2 %v106_v22  ;;  %195 = vmatpush.msrb.mxu0 %v185_v41  ;;  %v212_v11 = vld [vmem:[%s522_s4] sm:$0xff]  ;;  %v249_v12 = vld [vmem:[%s523_s5 + $0x18] sm:$0xff]  ;;  %v248_v13 = vld [vmem:[%s523_s5 + $0x10] sm:$0xff] }
  0x1c   :  { %161 = vmatpush.msra.mxu3 %v123_v23  ;;  %235 = vmatpush.msrb.mxu1 %v217_v0  ;;  %v190_v14 = vld [vmem:[%s524_s6 + $0x2] ss:$0 sm:$0xff]  ;;  %v247_v18 = vld [vmem:[%s523_s5 + $0x8] sm:$0xff]  ;;  %v220_v20 = vld [vmem:[%s524_s6 + $0x3] ss:$0 sm:$0xff] }
  0x1d   :  { %143 = vmatpush.msra.mxu2 %v105_v24  ;;  %196 = vmatpush.msrb.mxu0 %v184_v42  ;;  %v246_v19 = vld [vmem:[%s523_s5] sm:$0xff]  ;;  %s284_s5 = sshll.u32 %s525_s7, 4  ;;  %s285_s5 = int_to_ptr.hbm [resolvable:$true] %s284_s5 }
  0x1e   :  { %162 = vmatpush.msra.mxu3 %v122_v25  ;;  %236 = vmatpush.msrb.mxu1 %v216_v1  ;;  %v250_v24 = vld [vmem:[%s524_s6 + $0x4] ss:$0 sm:$0xff] }
  0x1f   :  { %144 = vmatpush.msra.mxu2 %v104_v26  ;;  %197 = vmatpush.msrb.mxu0 %v183_v43 }
  0x20   :  { %163 = vmatpush.msra.mxu3 %v121_v27  ;;  %237 = vmatpush.msrb.mxu1 %v215_v2 }
  0x21   :  { %145 = vmatpush.msra.mxu2 %v103_v28  ;;  %198 = vmatpush.msrb.mxu0 %v182_v44 }
  0x22   :  { %164 = vmatpush.msra.mxu3 %v120_v29  ;;  %238 = vmatpush.msrb.mxu1 %v214_v9 }
  0x23   :  { %146 = vmatpush.msra.mxu2 %v102_v30  ;;  %199 = vmatpush.msrb.mxu0 %v181_v45 }
  0x24   :  { %165 = vmatpush.msra.mxu3 %v119_v31  ;;  %239 = vmatpush.msrb.mxu1 %v213_v10 }
  0x25   :  { %147 = vmatpush.msra.mxu2 %v101_v32  ;;  %200 = vmatpush.msrb.mxu0 %v180_v46 }
  0x26   :  { %166 = vmatpush.msra.mxu3 %v118_v33  ;;  %240 = vmatpush.msrb.mxu1 %v212_v11 }
  0x27   :  { %148 = vmatpush.msra.mxu2 %v100_v34  ;;  %201 = vmatpush.msrb.mxu0 %v179_v47 }
  0x28   :  { %167 = vmatpush.msra.mxu3 %v117_v35  ;;  %267 = vmatpush.msra.mxu1 %v249_v12 }
  0x29   :  { %202 = vmatpush.msrb.mxu0 %v178_v48 }
  0x2a   :  { %168 = vmatpush.msra.mxu3 %v116_v36  ;;  %268 = vmatpush.msra.mxu1 %v248_v13 }
  0x2b   :  { %203 = vmatpush.msrb.mxu0 %v177_v58 }
  0x2c   :  { %269 = vmatpush.msra.mxu1 %v247_v18 }
  0x2d   :  { %204 = vmatpush.msrb.mxu0 %v176_v59 }
  0x2e   :  { %270 = vmatpush.msra.mxu1 %v246_v19 }
  0x2f   :  { %205 = vmatpush.msrb.mxu0 %v175_v60 }
  0x31   :  { %206 = vmatpush.msrb.mxu0 %v174_v61 }
  0x87   :  { %v75_v52 = vpop.f32.mrf.mxu0 }
  0x88   :  { %v95_v53 = vpop.f32.mrf.mxu1  ;;  %v76_v54 = vadd.f32 %v75_v52, %v50_v50 }
  0x89   :  { %v96_v55 = vadd.f32 %v95_v53, %v51_v51 }
  0x8a   :  { %v98_v56 = vmax.f32 %v76_v54, 0.0 }
  0x8b   :  { %v99_v57 = vmax.f32 %v96_v55, 0.0 }
  0x8c   :  { %149 = vmatmul.f32.vlgmr.msra.gmra.mxu2 %v98_v56 }
  0x8d   :  { %169 = vmatmul.f32.vlgmr.msra.gmra.mxu3 %v99_v57 }
 0x10f   :  { %v150_v4 = vpop.f32.mrf.mxu2 }
 0x110   :  { %v170_v5 = vpop.f32.mrf.mxu3  ;;  %v151_v6 = vadd.f32 %v150_v4, %v132_v3 }
 0x112   :  { %v171_v7 = vadd.f32 %v170_v5, %v151_v6 }
 0x114   :  { %v173_v8 = vmax.f32 %v171_v7, 0.0 }
 0x116   :  { %207 = vmatmul.f32.vlgmr.msrb.gmra.mxu0 %v173_v8 }
 0x193   :  { %v208_v15 = vpop.f32.mrf.mxu0 }
 0x194   :  { %v209_v16 = vadd.f32 %v208_v15, %v190_v14 }
 0x196   :  { %v211_v17 = vmax.f32 %v209_v16, 0.0 }
 0x198   :  { %296 = vmatmul.msk.f32.vlgmr.msrb.gmra.mxu1 %vm221_vm1, %v211_v17 }
 0x215   :  { %v242_v21 = vpop.f32.mrf.mxu1 }
 0x216   :  { %v243_v22 = vadd.f32 %v242_v21, %v220_v20 }
 0x218   :  { %v245_v23 = vmax.f32 %v243_v22, 0.0 }
 0x21a   :  { %297 = vmatmul.msk.f32.vlgmr.msra.gmra.mxu1 %vm251_vm2, %v245_v23 }
 0x297   :  { %v272_v25 = vpop.f32.mrf.mxu1 }
 0x298   :  { %v273_v26 = vadd.f32 %v272_v25, %v250_v24 }
 0x29a   :  { %276 = vst.msk [vmem:[#allocation5] sm:$0xff] %vm275_vm3, %v273_v26 }
 0x29b   :  { %287 = dma.vmem_to_hbm [thread:$0]  %s283_s28, 128, %s285_s5, [#allocation4]  }
 0x29c   :  { %352 = dma.done.wait [#allocation4], 128  }
 0x29d   :  { %353 = vsyncadd [#allocation4], 4294967168 }
 0x29e   :  { %292 = vsyncpa [#allocation3], 1 }
 0x29f   :  { %293 = vsyncpa [#allocation4], 1 }

</bundles_post_ra>
